<compile_context>
chip_gen: v5e
topology: v5e:2x2
jax: 0.10.0
libtpu: 0.0.40
codegen_flags: <defaults>
</compile_context>

<pallas_src>
import jax
import jax.numpy as jnp
from jax.experimental import pallas as pl
from jax.experimental.pallas import tpu as pltpu

LANES = 128          # lane width of a vreg
SUBLANES = 8         # sublane height of a f32 vreg


def _ceil_div(a, b):
    return -(-a // b)


def cheat_kernel(params_ref, x0_ref, x1_ref, o_ref):
    # params_ref: SMEM (4,) f32  -> [w1, b1, w2, b2] (scalar prefetch)
    # x0_ref, x1_ref: VMEM (tile_rows, 128) f32 -- lane-dense batch slabs
    # o_ref:          VMEM (tile_rows, 128) f32
    w1 = params_ref[0]
    b1 = params_ref[1]
    w2 = params_ref[2]
    b2 = params_ref[3]

    x0 = x0_ref[...]
    x1 = x1_ref[...]

    l1 = jnp.sin(x0)
    l2 = jnp.cos(x0)
    p1 = jnp.cos(30.0 * x1)
    p2 = jnp.sin(30.0 * x1)

    # Scalars multiplied straight into vregs (no explicit broadcasts).
    o_ref[...] = (p1 * w1 + b1) * l1 + (p2 * w2 + b2) * l2


def _forward_reference(x, w1, b1, w2, b2):
    """Plain-XLA path; used for tiny batches and for correctness checks."""
    l1 = jnp.sin(x[:, 0])[:, None]
    l2 = jnp.cos(x[:, 0])[:, None]
    p1 = jnp.cos(30.0 * x[:, 1])[:, None]
    p2 = jnp.sin(30.0 * x[:, 1])[:, None]
    return (p1 * w1 + b1) * l1 + (p2 * w2 + b2) * l2


def _forward_pallas(x, w1, b1, w2, b2, *, tile_rows=512):
    """x: (N, 2) f32. Returns (N, 1) f32 via the tiled Pallas kernel."""
    n = x.shape[0]

    # Lane-dense layout: pad N up to a whole number of (tile_rows, 128) tiles.
    rows_needed = _ceil_div(n, LANES)
    tile_rows = max(SUBLANES, min(tile_rows, _ceil_div(rows_needed, SUBLANES) * SUBLANES))
    tile_rows = _ceil_div(tile_rows, SUBLANES) * SUBLANES      # multiple of 8
    rows = _ceil_div(rows_needed, tile_rows) * tile_rows
    n_pad = rows * LANES

    x0 = jnp.pad(x[:, 0].astype(jnp.float32), (0, n_pad - n)).reshape(rows, LANES)
    x1 = jnp.pad(x[:, 1].astype(jnp.float32), (0, n_pad - n)).reshape(rows, LANES)
    params = jnp.stack([w1, b1, w2, b2]).astype(jnp.float32)   # (4,) -> SMEM

    grid = (rows // tile_rows,)

    out = pl.pallas_call(
        cheat_kernel,
        out_shape=jax.ShapeDtypeStruct((rows, LANES), jnp.float32),
        grid_spec=pltpu.PrefetchScalarGridSpec(
            num_scalar_prefetch=1,                 # params -> SMEM, prefetched
            grid=grid,
            in_specs=[
                pl.BlockSpec((tile_rows, LANES), lambda i, p: (i, 0)),
                pl.BlockSpec((tile_rows, LANES), lambda i, p: (i, 0)),
            ],
            out_specs=pl.BlockSpec((tile_rows, LANES), lambda i, p: (i, 0)),
        ),
        compiler_params=pltpu.CompilerParams(
            dimension_semantics=("parallel",),     # lets v7x split batch over 2 TCs
        ),
        cost_estimate=pl.CostEstimate(
            flops=8 * n_pad,
            transcendentals=4 * n_pad,
            bytes_accessed=12 * n_pad,             # 2 f32 in + 1 f32 out per elem
        ),
    )(params, x0, x1)

    return out.reshape(n_pad, 1)[:n]


def cheat_model_forward(x, w1, b1, w2, b2, *, min_pallas_n=8192, tile_rows=512):
    """Dispatch: tiny batches go straight to fused XLA, large ones to Pallas."""
    if x.shape[0] < min_pallas_n:
        return _forward_reference(x, w1, b1, w2, b2)
    return _forward_pallas(x, w1, b1, w2, b2, tile_rows=tile_rows)


if __name__ == "__main__":
    key = jax.random.PRNGKey(0)
    k_x1, k_x2, k_w1, k_b1, k_w2, k_b2 = jax.random.split(key, 6)

    # Deterministic "Linear(1,1)" parameters (scalar weight + scalar bias each).
    w1 = jax.random.normal(k_w1, (), dtype=jnp.float32)
    b1 = jax.random.normal(k_b1, (), dtype=jnp.float32)
    w2 = jax.random.normal(k_w2, (), dtype=jnp.float32)
    b2 = jax.random.normal(k_b2, (), dtype=jnp.float32)

    # Case 1: small, non-128-aligned batch -> exercises padding, grid=(1,).
    N1 = 300
    x_small = jax.random.normal(k_x1, (N1, 2), dtype=jnp.float32)
    out_small = jax.block_until_ready(_forward_pallas(x_small, w1, b1, w2, b2))
    ref_small = _forward_reference(x_small, w1, b1, w2, b2)
    assert out_small.shape == (N1, 1)
    assert jnp.allclose(out_small, ref_small, atol=1e-5, rtol=1e-5), "mismatch (small)"

    # Case 2: multi-tile grid (tile_rows=8 -> 4 grid steps) to check pipelining.
    N2 = 4096
    x_big = jax.random.normal(k_x2, (N2, 2), dtype=jnp.float32)
    out_big = jax.block_until_ready(_forward_pallas(x_big, w1, b1, w2, b2, tile_rows=8))
    ref_big = _forward_reference(x_big, w1, b1, w2, b2)
    assert out_big.shape == (N2, 1)
    assert jnp.allclose(out_big, ref_big, atol=1e-5, rtol=1e-5), "mismatch (big)"

    # Dispatch path (tiny batch -> plain XLA) still matches the reference.
    out_disp = jax.block_until_ready(cheat_model_forward(x_small, w1, b1, w2, b2))
    assert jnp.allclose(out_disp, ref_small, atol=1e-5, rtol=1e-5), "mismatch (dispatch)"

    print("KERNEL_OK")
</pallas_src>

<mosaic_0001>
module attributes {stable_mosaic.version = 11 : i64} {
  func.func @cheat_kernel(%arg0: i32, %arg1: memref<4xf32, #tpu.memory_space<smem>>, %arg2: memref<8x128xf32, #tpu.memory_space<vmem>>, %arg3: memref<8x128xf32, #tpu.memory_space<vmem>>, %arg4: memref<8x128xf32, #tpu.memory_space<vmem>>) attributes {dimension_semantics = [#tpu.dimension_semantics<parallel>], iteration_bounds = array<i64: 1>, scalar_prefetch = 1 : i64, scratch_operands = 0 : i64, tpu.core_type = #tpu.core_type<tc>, window_params = [{transform_indices = @transform_0, window_bounds = array<i64: 8, 128>}, {transform_indices = @transform_1, window_bounds = array<i64: 8, 128>}, {transform_indices = @transform_2, window_bounds = array<i64: 8, 128>}]} {
    %c0 = arith.constant 0 : index
    %0 = memref.load %arg1[%c0] : memref<4xf32, #tpu.memory_space<smem>>
    %c1 = arith.constant 1 : index
    %1 = memref.load %arg1[%c1] : memref<4xf32, #tpu.memory_space<smem>>
    %c2 = arith.constant 2 : index
    %2 = memref.load %arg1[%c2] : memref<4xf32, #tpu.memory_space<smem>>
    %c3 = arith.constant 3 : index
    %3 = memref.load %arg1[%c3] : memref<4xf32, #tpu.memory_space<smem>>
    %c0_0 = arith.constant 0 : index
    %c0_1 = arith.constant 0 : index
    %4 = vector.load %arg2[%c0_0, %c0_1] : memref<8x128xf32, #tpu.memory_space<vmem>>, vector<8x128xf32>
    %c0_2 = arith.constant 0 : index
    %c0_3 = arith.constant 0 : index
    %5 = vector.load %arg3[%c0_2, %c0_3] : memref<8x128xf32, #tpu.memory_space<vmem>>, vector<8x128xf32>
    %6 = math.sin %4 : vector<8x128xf32>
    %7 = math.cos %4 : vector<8x128xf32>
    %cst = arith.constant 3.000000e+01 : f32
    %8 = vector.broadcast %cst : f32 to vector<8x128xf32>
    %9 = arith.mulf %8, %5 : vector<8x128xf32>
    %10 = math.cos %9 : vector<8x128xf32>
    %cst_4 = arith.constant 3.000000e+01 : f32
    %11 = vector.broadcast %cst_4 : f32 to vector<8x128xf32>
    %12 = arith.mulf %11, %5 : vector<8x128xf32>
    %13 = math.sin %12 : vector<8x128xf32>
    %14 = vector.broadcast %0 : f32 to vector<8x128xf32>
    %15 = arith.mulf %10, %14 : vector<8x128xf32>
    %16 = vector.broadcast %1 : f32 to vector<8x128xf32>
    %17 = arith.addf %15, %16 : vector<8x128xf32>
    %18 = arith.mulf %17, %6 : vector<8x128xf32>
    %19 = vector.broadcast %2 : f32 to vector<8x128xf32>
    %20 = arith.mulf %13, %19 : vector<8x128xf32>
    %21 = vector.broadcast %3 : f32 to vector<8x128xf32>
    %22 = arith.addf %20, %21 : vector<8x128xf32>
    %23 = arith.mulf %22, %7 : vector<8x128xf32>
    %24 = arith.addf %18, %23 : vector<8x128xf32>
    %c0_5 = arith.constant 0 : index
    %c0_6 = arith.constant 0 : index
    %25 = vector.load %arg4[%c0_5, %c0_6] : memref<8x128xf32, #tpu.memory_space<vmem>>, vector<8x128xf32>
    tpu.vector_store %arg4[%c0_5, %c0_6], %24 {strides = array<i32>} : memref<8x128xf32, #tpu.memory_space<vmem>>, vector<8x128xf32>,
    return
  }
  func.func @transform_0(%arg0: i32, %arg1: memref<4xf32, #tpu.memory_space<smem>>) -> (i32, i32) {
    %c0_i32 = arith.constant 0 : i32
    %c0_i32_0 = arith.constant 0 : i32
    return %arg0, %c0_i32 : i32, i32
  }
  func.func @transform_1(%arg0: i32, %arg1: memref<4xf32, #tpu.memory_space<smem>>) -> (i32, i32) {
    %c0_i32 = arith.constant 0 : i32
    %c0_i32_0 = arith.constant 0 : i32
    return %arg0, %c0_i32 : i32, i32
  }
  func.func @transform_2(%arg0: i32, %arg1: memref<4xf32, #tpu.memory_space<smem>>) -> (i32, i32) {
    %c0_i32 = arith.constant 0 : i32
    %c0_i32_0 = arith.constant 0 : i32
    return %arg0, %c0_i32 : i32, i32
  }
}

</mosaic_0001>

<bundles_post_ra>
// kernel: tpu_custom_call.1
= control target key start
LH: loop header
LB: loop body
LE: loop exit
PB: predicated region body
PF: predicated region fallthrough
CT: control target
= control target key end

     0   :  { %s822_s15 = smov [#allocation3]   ;;  %s1027_s0 = inlined_call_operand.hbm [shape: f32[4], index: 0, kind: input, shape index: {}]   ;;  %s1028_s1 = inlined_call_operand.hbm [shape: f32[8,128], index: 1, kind: input, shape index: {}]   ;;  %s1029_s2 = inlined_call_operand.hbm [shape: f32[8,128], index: 2, kind: input, shape index: {}]   ;;  %s1030_s3 = inlined_call_operand.hbm [shape: f32[8,128], index: 3, kind: output, shape index: {}]  }
   0x1   :  { %s9_s14 = sshll.u32 %s1027_s0, 4  ;;  %s10_s14 = int_to_ptr.hbm [resolvable:$true] %s9_s14 }
   0x2   :  { %12 = dma.hbm_to_smem %s10_s14, 16, %s822_s15, [#allocation2] }
   0x3   :  { %814 = dma.done.wait [#allocation2], 16 }
   0x4   :  { %815 = vsyncadd [#allocation2], 4294967280 }
   0x5   :  { %15 = sfence }
   0x6   :  { %16 = vsyncpa [#allocation5], 0 }
   0x7   :  { %17 = vsyncpa [#allocation8], 0 }
   0x8   :  { %18 = vsyncpa [#allocation6], 0  ;;  %s24_s18 = sshll.u32 %s1028_s1, 4  ;;  %s823_s19 = smov [#allocation4]   ;;  %s25_s18 = int_to_ptr.hbm [resolvable:$true] %s24_s18 }
   0x9   :  { %s26_s20 = sshll.u32 %s823_s19, 4  ;;  %s35_s0 = sshll.u32 %s1029_s2, 4  ;;  %s27_s20 = int_to_ptr.vmem [resolvable:$true] %s26_s20  ;;  %s36_s0 = int_to_ptr.hbm [resolvable:$true] %s35_s0 }
   0xa   :  { %29 = dma.hbm_to_vmem [thread:$0]  %s25_s18, 128, %s27_s20, [#allocation5]  }
   0xb   :  { %s824_s23 = smov [#allocation7]  }
   0xc   :  { %s37_s24 = sshll.u32 %s824_s23, 4  ;;  %s38_s24 = int_to_ptr.vmem [resolvable:$true] %s37_s24 }
   0xd   :  { %40 = dma.hbm_to_vmem [thread:$0]  %s36_s0, 128, %s38_s24, [#allocation8]  }
   0xe   :  { %816 = dma.done.wait [#allocation5], 128  }
   0xf   :  { %817 = vsyncadd [#allocation5], 4294967168 }
  0x10   :  { %818 = dma.done.wait [#allocation8], 128  }
  0x11   :  { %819 = vsyncadd [#allocation8], 4294967168  ;;  %v862_v0 = vld [vmem:[#allocation4] sm:$0xff]  ;;  %v54_v1 = vld [vmem:[#allocation7] sm:$0xff]  ;;  %v825_v22 = vmov 683565275  }
  0x12   :  { %v55_v2 = vand.u32 2147483647, %v862_v0  ;;  %v58_v3 = vand.u32 2139095040, %v862_v0  ;;  %v866_v4 = vmul.f32 30.0, %v54_v1  ;;  %v826_v24 = vmov 2475754826  }
  0x13   :  { %v827_v26 = vmov 2131351028   ;;  %v828_v28 = vmov 2102212464   ;;  %v829_v30 = vmov 920167782  }
  0x14   :  { %v59_v5 = vshrl.u32 %v58_v3, 23  ;;  %v62_v6 = vand.u32 8388607, %v55_v2  ;;  %v368_v7 = vand.u32 2139095040, %v866_v4  ;;  %v365_v8 = vand.u32 2147483647, %v866_v4 }
  0x15   :  { %v830_v39 = vmov 1326507024   ;;  %s1000_s1 = sld [smem:[#allocation3]]  ;;  %s832_s27 = smov [#allocation9]  }
  0x16   :  { %v707_v9 = vadd.s32 4294967169, %v59_v5  ;;  %v369_v10 = vshrl.u32 %v368_v7, 23  ;;  %v63_v11 = vor.u32 8388608, %v62_v6  ;;  %v372_v14 = vand.u32 8388607, %v365_v8  ;;  %s1002_s2 = sld [smem:[#allocation3 + $0x2]] }
  0x17   :  { %s1004_s25 = sld [smem:[#allocation3 + $0x1]]  ;;  %s691_s28 = sshll.u32 %s832_s27, 4  ;;  %s692_s28 = int_to_ptr.vmem [resolvable:$true] %s691_s28 }
  0x18   :  { %v65_v12 = vadd.s32 1, %v707_v9  ;;  %v713_v13 = vadd.s32 4294967169, %v369_v10  ;;  %v874_v17 = vshll.u32 %v63_v11, 8  ;;  %v373_v20 = vor.u32 8388608, %v372_v14  ;;  %s1006_s26 = sld [smem:[#allocation3 + $0x3]]  ;;  %s693_s4 = sshll.u32 %s1030_s3, 4  ;;  %s694_s4 = int_to_ptr.hbm [resolvable:$true] %s693_s4 }
  0x1a   :  { %vm66_vm0 = vcmp.gt.s32.totalorder %v65_v12, 0  ;;  %v375_v15 = vadd.s32 1, %v713_v13  ;;  %v104_v32 = vand.u32 65535, %v874_v17  ;;  %v105_v57 = vshrl.u32 %v874_v17, 16 }
  0x1b   :  { %v67_v16 = vsel %vm66_vm0, %v65_v12, 0  ;;  %v890_v58 = vshll.u32 %v373_v20, 8 }
  0x1c   :  { %v69_v18 = vand.u32 31, %v67_v16  ;;  %vm376_vm1 = vcmp.gt.s32.totalorder %v375_v15, 0  ;;  %v68_v19 = vshrl.u32 %v67_v16, 5 }
  0x1d   :  { %v377_v33 = vsel %vm376_vm1, %v375_v15, 0 }
  0x1e   :  { %v70_v21 = vsub.s32 32, %v69_v18  ;;  %v72_v23 = vshll.u32 %v825_v22, %v69_v18  ;;  %v75_v25 = vshll.u32 %v826_v24, %v69_v18  ;;  %v78_v27 = vshll.u32 %v827_v26, %v69_v18 }
  0x1f   :  { %v81_v29 = vshll.u32 %v828_v28, %v69_v18  ;;  %v84_v31 = vshll.u32 %v829_v30, %v69_v18  ;;  %vm87_vm2 = vcmp.lt.s32.totalorder %v68_v19, 1  ;;  %vm88_vm3 = vcmp.lt.s32.totalorder %v68_v19, 2 }
  0x20   :  { %v71_v34 = vshrl.u32 %v825_v22, %v70_v21  ;;  %v73_v35 = vshrl.u32 %v826_v24, %v70_v21  ;;  %v76_v36 = vshrl.u32 %v827_v26, %v70_v21  ;;  %v79_v37 = vshrl.u32 %v828_v28, %v70_v21 }
  0x21   :  { %v82_v38 = vshrl.u32 %v829_v30, %v70_v21  ;;  %v85_v40 = vshrl.u32 %v830_v39, %v70_v21  ;;  %vm90_vm4 = vcmp.lt.s32.totalorder %v68_v19, 4  ;;  %vm89_vm5 = vcmp.lt.s32.totalorder %v68_v19, 3 }
  0x22   :  { %v74_v41 = vor.u32 %v73_v35, %v72_v23  ;;  %v77_v42 = vor.u32 %v76_v36, %v75_v25  ;;  %v80_v43 = vor.u32 %v79_v37, %v78_v27  ;;  %v884_v46 = vand.u32 31, %v377_v33 }
  0x23   :  { %v83_v44 = vor.u32 %v82_v38, %v81_v29  ;;  %v86_v45 = vor.u32 %v85_v40, %v84_v31  ;;  %v897_v62 = vshrl.u32 %v377_v33, 5  ;;  %v831_v36 = vmov 0  }
  0x24   :  { %v91_v47 = vsel %vm87_vm2, %v71_v34, %v74_v41  ;;  %v92_v48 = vsel %vm90_vm4, %v80_v43, 2102212464  ;;  %v95_v49 = vsel %vm87_vm2, %v74_v41, %v77_v42  ;;  %v99_v50 = vsel %vm87_vm2, %v77_v42, %v80_v43 }
  0x25   :  { %v93_v51 = vsel %vm89_vm5, %v77_v42, %v92_v48  ;;  %v96_v52 = vsel %vm90_vm4, %v83_v44, 920167782  ;;  %v100_v53 = vsel %vm90_vm4, %v86_v45, 1326507024  ;;  %v887_v54 = vsub.s32 32, %v884_v46 }
  0x26   :  { %v97_v55 = vsel %vm89_vm5, %v80_v43, %v96_v52  ;;  %v101_v56 = vsel %vm89_vm5, %v83_v44, %v100_v53  ;;  %v893_v59 = vsel %vm88_vm3, %v91_v47, %v93_v51  ;;  %v382_v6 = vshll.u32 %v825_v22, %v884_v46 }
  0x27   :  { %v98_v60 = vsel %vm88_vm3, %v95_v49, %v97_v55  ;;  %v102_v61 = vsel %vm88_vm3, %v99_v50, %v101_v56  ;;  %v383_v7 = vshrl.u32 %v826_v24, %v887_v54  ;;  %v385_v9 = vshll.u32 %v826_v24, %v884_v46 }
  0x28   :  { %v106_v63 = vand.u32 65535, %v102_v61  ;;  %v107_v1 = vshrl.u32 %v102_v61, 16  ;;  %v128_v3 = vand.u32 65535, %v98_v60  ;;  %v129_v5 = vshrl.u32 %v98_v60, 16 }
  0x29   :  { %v386_v10 = vshrl.u32 %v827_v26, %v887_v54  ;;  %v388_v14 = vshll.u32 %v827_v26, %v884_v46  ;;  %v905_v35 = vor.u32 %v383_v7, %v382_v6  ;;  %v391_v41 = vshll.u32 %v828_v28, %v884_v46 }
  0x2a   :  { %v108_v11 = vmul.u32 %v106_v63, %v104_v32  ;;  %v109_v12 = vmul.u32 %v107_v1, %v104_v32  ;;  %v110_v13 = vmul.u32 %v106_v63, %v105_v57  ;;  %v111_v15 = vmul.u32 %v107_v1, %v105_v57 }
  0x2b   :  { %v130_v16 = vmul.u32 %v128_v3, %v104_v32  ;;  %v131_v18 = vmul.u32 %v129_v5, %v104_v32  ;;  %v132_v19 = vmul.u32 %v128_v3, %v105_v57  ;;  %v133_v25 = vmul.u32 %v129_v5, %v105_v57 }
  0x2c   :  { %v112_v20 = vshll.u32 %v109_v12, 16  ;;  %v113_v21 = vshrl.u32 %v109_v12, 16  ;;  %v114_v23 = vshll.u32 %v110_v13, 16  ;;  %v115_v27 = vshrl.u32 %v110_v13, 16 }
  0x2d   :  { %v134_v29 = vshll.u32 %v131_v18, 16  ;;  %v135_v31 = vshrl.u32 %v131_v18, 16  ;;  %v136_v33 = vshll.u32 %v132_v19, 16  ;;  %v137_v34 = vshrl.u32 %v132_v19, 16 }
  0x2e   :  { %vm116_vm6 = vc.u32 %v108_v11, %v112_v20  ;;  %v118_v24 = vadd.s32 %v112_v20, %v108_v11  ;;  %v389_v32 = vshrl.u32 %v828_v28, %v887_v54  ;;  %v914_v44 = vor.u32 %v386_v10, %v385_v9 }
  0x2f   :  { %v117_v26 = vsel %vm116_vm6, 1, %v831_v36  ;;  %vm138_vm7 = vc.u32 %v130_v16, %v134_v29  ;;  %v140_v37 = vadd.s32 %v134_v29, %v130_v16  ;;  %v392_v49 = vshrl.u32 %v829_v30, %v887_v54 }
  0x30   :  { %v119_v38 = vadd.s32 %v117_v26, %v111_v15  ;;  %vm120_vm8 = vc.u32 %v118_v24, %v114_v23  ;;  %v139_v40 = vsel %vm138_vm7, 1, %v831_v36  ;;  %v390_v48 = vor.u32 %v389_v32, %v388_v14 }
  0x31   :  { %v121_v42 = vsel %vm120_vm8, 1, %v831_v36  ;;  %v141_v43 = vadd.s32 %v139_v40, %v133_v25  ;;  %vm142_vm9 = vc.u32 %v140_v37, %v136_v33  ;;  %v394_v51 = vshll.u32 %v829_v30, %v884_v46 }
  0x32   :  { %v123_v45 = vadd.s32 %v121_v42, %v119_v38  ;;  %v143_v47 = vsel %vm142_vm9, 1, %v831_v36  ;;  %v395_v28 = vshrl.u32 %v830_v39, %v887_v54  ;;  %vm397_vm10 = vcmp.lt.s32.totalorder %v897_v62, 1 }
  0x33   :  { %v145_v50 = vadd.s32 %v143_v47, %v141_v43  ;;  %v924_v53 = vadd.s32 %v140_v37, %v136_v33  ;;  %v393_v55 = vor.u32 %v392_v49, %v391_v41  ;;  %vm399_vm11 = vcmp.lt.s32.totalorder %v897_v62, 3 }
  0x34   :  { %v124_v52 = vadd.s32 %v123_v45, %v113_v21  ;;  %v396_v57 = vor.u32 %v395_v28, %v394_v51  ;;  %vm398_vm12 = vcmp.lt.s32.totalorder %v897_v62, 2  ;;  %vm400_vm13 = vcmp.lt.s32.totalorder %v897_v62, 4 }
  0x35   :  { %v146_v56 = vadd.s32 %v145_v50, %v135_v31  ;;  %v405_v30 = vsel %vm397_vm10, %v905_v35, %v914_v44  ;;  %v406_v39 = vsel %vm400_vm13, %v393_v55, 920167782  ;;  %v414_v63 = vand.u32 65535, %v890_v58 }
  0x36   :  { %v929_v60 = vadd.s32 %v124_v52, %v115_v27  ;;  %v407_v61 = vsel %vm399_vm11, %v390_v48, %v406_v39  ;;  %v415_v1 = vshrl.u32 %v890_v58, 16  ;;  %v148_v3 = vmul.u32 %v874_v17, %v893_v59 }
  0x37   :  { %v147_v46 = vadd.s32 %v146_v56, %v137_v34  ;;  %v408_v5 = vsel %vm398_vm12, %v405_v30, %v407_v61  ;;  %v409_v6 = vsel %vm397_vm10, %v914_v44, %v390_v48  ;;  %v410_v9 = vsel %vm400_vm13, %v396_v57, 1326507024 }
  0x38   :  { %vm150_vm14 = vc.u32 %v929_v60, %v924_v53  ;;  %v438_v10 = vand.u32 65535, %v408_v5  ;;  %v439_v11 = vshrl.u32 %v408_v5, 16  ;;  %v411_v12 = vsel %vm399_vm11, %v393_v55, %v410_v9 }
  0x39   :  { %v151_v7 = vadd.s32 1, %v147_v46  ;;  %v412_v59 = vsel %vm398_vm12, %v409_v6, %v411_v12  ;;  %v381_v38 = vshrl.u32 %v825_v22, %v887_v54  ;;  %v402_v41 = vsel %vm400_vm13, %v390_v48, 2102212464 }
  0x3a   :  { %v441_v13 = vmul.u32 %v439_v11, %v414_v63  ;;  %v416_v15 = vand.u32 65535, %v412_v59  ;;  %v417_v16 = vshrl.u32 %v412_v59, 16  ;;  %v440_v18 = vmul.u32 %v438_v10, %v414_v63 }
  0x3b   :  { %v152_v17 = vsel %vm150_vm14, %v151_v7, %v147_v46  ;;  %v442_v19 = vmul.u32 %v438_v10, %v415_v1  ;;  %v443_v26 = vmul.u32 %v439_v11, %v415_v1  ;;  %v401_v30 = vsel %vm397_vm10, %v381_v38, %v905_v35 }
  0x3c   :  { %v153_v14 = vadd.s32 %v152_v17, %v148_v3  ;;  %v444_v20 = vshll.u32 %v441_v13, 16  ;;  %v418_v23 = vmul.u32 %v416_v15, %v414_v63  ;;  %v419_v25 = vmul.u32 %v417_v16, %v414_v63 }
  0x3d   :  { %v420_v27 = vmul.u32 %v416_v15, %v415_v1  ;;  %v446_v29 = vshll.u32 %v442_v19, 16  ;;  %v421_v33 = vmul.u32 %v417_v16, %v415_v1  ;;  %v445_v51 = vshrl.u32 %v441_v13, 16 }
  0x3e   :  { %v154_v21 = vadd.s32 536870912, %v153_v14  ;;  %v422_v24 = vshll.u32 %v419_v25, 16  ;;  %vm448_vm15 = vc.u32 %v440_v18, %v444_v20  ;;  %v450_v37 = vadd.s32 %v444_v20, %v440_v18 }
  0x3f   :  { %v424_v34 = vshll.u32 %v420_v27, 16  ;;  %v449_v43 = vsel %vm448_vm15, 1, %v831_v36  ;;  %v423_v47 = vshrl.u32 %v419_v25, 16  ;;  %v425_v52 = vshrl.u32 %v420_v27, 16 }
  0x40   :  { %v956_v31 = vshrl.u32 %v154_v21, 30  ;;  %vm426_vm0 = vc.u32 %v418_v23, %v422_v24  ;;  %v428_v40 = vadd.s32 %v422_v24, %v418_v23  ;;  %vm452_vm1 = vc.u32 %v450_v37, %v446_v29 }
  0x41   :  { %v427_v42 = vsel %vm426_vm0, 1, %v831_v36  ;;  %v451_v28 = vadd.s32 %v449_v43, %v443_v26  ;;  %v453_v22 = vsel %vm452_vm1, 1, %v831_v36  ;;  %v447_v48 = vshrl.u32 %v442_v19, 16 }
  0x42   :  { %v156_v32 = vshll.u32 %v956_v31, 30  ;;  %v429_v49 = vadd.s32 %v427_v42, %v421_v33  ;;  %vm430_vm2 = vc.u32 %v428_v40, %v424_v34  ;;  %v403_v39 = vsel %vm399_vm11, %v914_v44, %v402_v41 }
  0x43   :  { %v431_v50 = vsel %vm430_vm2, 1, %v831_v36  ;;  %v455_v56 = vadd.s32 %v453_v22, %v451_v28  ;;  %v454_v63 = vadd.s32 %v450_v37, %v446_v29  ;;  %v404_v5 = vsel %vm398_vm12, %v401_v30, %v403_v39 }
  0x44   :  { %v157_v45 = vsub.s32 %v153_v14, %v156_v32  ;;  %v433_v55 = vadd.s32 %v431_v50, %v429_v49  ;;  %v149_v7 = vadd.s32 %v924_v53, %v929_v60  ;;  %v458_v10 = vmul.u32 %v890_v58, %v404_v5 }
  0x45   :  { %v456_v1 = vadd.s32 %v455_v56, %v445_v51  ;;  %vm57_vm6 = vcmp.lt.s32.totalorder %v862_v0, 0  ;;  %vm981_vm7 = vcmp.le.f32.partialorder %v55_v2, 0.7853982  ;;  %vm367_vm10 = vcmp.lt.s32.totalorder %v866_v4, 0 }
  0x46   :  { %vm158_vm3 = vcmp.lt.s32.totalorder %v157_v45, 0  ;;  %v159_v54 = vsub.s32 0, %v157_v45  ;;  %v434_v46 = vadd.s32 %v433_v55, %v423_v47  ;;  %vm366_vm11 = vcmp.le.f32.partialorder %v365_v8, 0.7853982 }
  0x47   :  { %v457_v6 = vadd.s32 %v456_v1, %v447_v48 }
  0x48   :  { %v160_v57 = vsel %vm158_vm3, %v159_v54, %v157_v45  ;;  %v435_v36 = vadd.s32 %v434_v46, %v425_v52  ;;  %v179_v54 = vsub.s32 4, %v956_v31 }
  0x49   :  { %v161_v61 = vclz %v160_v57  ;;  %v461_v35 = vadd.s32 1, %v457_v6 }
  0x4a   :  { %vm460_vm5 = vc.u32 %v435_v36, %v454_v63  ;;  %v459_v32 = vadd.s32 %v454_v63, %v435_v36  ;;  %v180_v57 = vsel %vm57_vm6, %v179_v54, %v956_v31  ;;  %v681_v54 = vstv %s1006_s26 }
  0x4b   :  { %v708_v3 = vadd.s32 4294967294, %v161_v61  ;;  %v462_v17 = vsel %vm460_vm5, %v461_v35, %v457_v6  ;;  %v182_v63 = vsel %vm981_vm7, 0, %v180_v57 }
  0x4c   :  { %v463_v14 = vadd.s32 %v462_v17, %v458_v10  ;;  %v199_v35 = vadd.s32 3, %v182_v63 }
  0x4d   :  { %vm709_vm4 = vcmp.lt.s32.totalorder %v708_v3, 0 }
  0x4e   :  { %v164_v9 = vsel %vm709_vm4, 0, %v708_v3  ;;  %v464_v16 = vadd.s32 536870912, %v463_v14 }
  0x4f   :  { %v165_v44 = vsub.s32 32, %v164_v9  ;;  %v166_v11 = vshll.u32 %v157_v45, %v164_v9  ;;  %v169_v12 = vsub.s32 4294967266, %v164_v9 }
  0x50   :  { %v465_v20 = vshrl.u32 %v464_v16, 30  ;;  %v354_v16 = vand.u32 3, %v182_v63 }
  0x51   :  { %v167_v59 = vshrl.u32 %v149_v7, %v165_v44  ;;  %v170_v13 = vadd.s32 127, %v169_v12 }
  0x52   :  { %v466_v60 = vshll.u32 %v465_v20, 30  ;;  %v489_v46 = vsub.s32 4, %v465_v20  ;;  %vm355_vm15 = vcmp.lt.s32.totalorder %v354_v16, 2  ;;  %vm359_vm0 = vcmp.eq.s32.totalorder %v354_v16, 2 }
  0x53   :  { %v168_v15 = vor.u32 %v167_v59, %v166_v11  ;;  %v171_v62 = vshll.u32 %v170_v13, 23  ;;  %v200_v59 = vand.u32 3, %v199_v35  ;;  %vm356_vm1 = vcmp.eq.s32.totalorder %v354_v16, 0 }
  0x54   :  { %v467_v23 = vsub.s32 %v463_v14, %v466_v60  ;;  %v490_v5 = vsel %vm367_vm10, %v489_v46, %v465_v20 }
  0x55   :  { %v172_v18 = vor.u32 4788187, %v171_v62  ;;  %v175_v19 = vcvt.s32.f32 %v168_v15  ;;  %v492_v9 = vsel %vm366_vm11, 0, %v490_v5  ;;  %vm201_vm12 = vcmp.lt.s32.totalorder %v200_v59, 2 }
  0x56   :  { %vm468_vm8 = vcmp.lt.s32.totalorder %v467_v23, 0  ;;  %v469_v27 = vsub.s32 0, %v467_v23  ;;  %v663_v8 = vadd.s32 3, %v492_v9  ;;  %v509_v20 = vand.u32 3, %v492_v9 }
  0x57   :  { %v173_v53 = vand.u32 2147483647, %v172_v18  ;;  %vm202_vm13 = vcmp.eq.s32.totalorder %v200_v59, 0  ;;  %vm205_vm14 = vcmp.eq.s32.totalorder %v200_v59, 2 }
  0x58   :  { %v470_v24 = vsel %vm468_vm8, %v469_v27, %v467_v23  ;;  %vm510_vm2 = vcmp.lt.s32.totalorder %v509_v20, 2  ;;  %vm514_vm3 = vcmp.eq.s32.totalorder %v509_v20, 2  ;;  %vm511_vm5 = vcmp.eq.s32.totalorder %v509_v20, 0 }
  0x59   :  { %v176_v21 = vmul.f32 %v175_v19, %v173_v53  ;;  %v471_v34 = vclz %v470_v24  ;;  %v664_v53 = vand.u32 3, %v663_v8  ;;  %vm198_vm8 = vweird.f32 %v862_v0 }
  0x5b   :  { %v177_v25 = vxor.u32 2147483648, %v176_v21  ;;  %v714_v37 = vadd.s32 4294967294, %v471_v34  ;;  %vm669_vm4 = vcmp.eq.s32.totalorder %v664_v53, 2 }
  0x5d   :  { %v178_v29 = vsel %vm57_vm6, %v177_v25, %v176_v21  ;;  %vm715_vm9 = vcmp.lt.s32.totalorder %v714_v37, 0  ;;  %vm665_vm6 = vcmp.lt.s32.totalorder %v664_v53, 2 }
  0x5e   :  { %v181_v33 = vsel %vm981_vm7, %v862_v0, %v178_v29  ;;  %v474_v2 = vsel %vm715_vm9, 0, %v714_v37  ;;  %vm666_vm7 = vcmp.eq.s32.totalorder %v664_v53, 0  ;;  %vm508_vm9 = vweird.f32 %v866_v4 }
  0x5f   :  { %v183_v26 = vmul.f32 %v181_v33, %v181_v33  ;;  %v475_v40 = vsub.s32 32, %v474_v2  ;;  %v476_v41 = vshll.u32 %v467_v23, %v474_v2  ;;  %v479_v42 = vsub.s32 4294967266, %v474_v2 }
  0x61   :  { %v191_v38 = vmul.f32 -0.00019511016, %v183_v26  ;;  %v477_v43 = vshrl.u32 %v459_v32, %v475_v40  ;;  %v480_v45 = vadd.s32 127, %v479_v42  ;;  %v184_v47 = vmul.f32 -0.001358992, %v183_v26 }
  0x62   :  { %v674_v42 = vstv %s1000_s1 }
  0x63   :  { %v192_v49 = vadd.f32 0.008332121, %v191_v38  ;;  %v478_v50 = vor.u32 %v477_v43, %v476_v41  ;;  %v481_v51 = vshll.u32 %v480_v45, 23  ;;  %v185_v52 = vadd.f32 0.041655596, %v184_v47 }
  0x64   :  { %v679_v43 = vstv %s1002_s2 }
  0x65   :  { %v482_v28 = vor.u32 4788187, %v481_v51  ;;  %v485_v22 = vcvt.s32.f32 %v478_v50  ;;  %v193_v55 = vmul.f32 %v192_v49, %v183_v26  ;;  %v186_v30 = vmul.f32 %v185_v52, %v183_v26 }
  0x67   :  { %v483_v48 = vand.u32 2147483647, %v482_v28  ;;  %v194_v39 = vadd.f32 -0.16666654, %v193_v55  ;;  %v187_v36 = vadd.f32 -0.4999988, %v186_v30 }
  0x69   :  { %v486_v56 = vmul.f32 %v485_v22, %v483_v48  ;;  %v195_v3 = vmul.f32 %v194_v39, %v183_v26  ;;  %v188_v44 = vmul.f32 %v187_v36, %v183_v26  ;;  %v676_v22 = vstv %s1004_s25 }
  0x6b   :  { %v487_v61 = vxor.u32 2147483648, %v486_v56  ;;  %v196_v11 = vadd.f32 1.0, %v195_v3  ;;  %v189_v15 = vadd.f32 1.0, %v188_v44 }
  0x6d   :  { %v488_v1 = vsel %vm367_vm10, %v487_v61, %v486_v56  ;;  %v197_v62 = vmul.f32 %v196_v11, %v181_v33  ;;  %v206_v58 = vxor.u32 2147483648, %v189_v15 }
  0x6e   :  { %v491_v6 = vsel %vm366_vm11, %v866_v4, %v488_v1 }
  0x6f   :  { %v493_v7 = vmul.f32 %v491_v6, %v491_v6  ;;  %v203_v23 = vxor.u32 2147483648, %v197_v62  ;;  %v207_v34 = vsel %vm205_vm14, %v206_v58, %v197_v62  ;;  %v361_v26 = vsel %vm359_vm0, %v206_v58, %v197_v62 }
  0x71   :  { %v494_v31 = vmul.f32 -0.001358992, %v493_v7  ;;  %v501_v10 = vmul.f32 -0.00019511016, %v493_v7  ;;  %v204_v24 = vsel %vm202_vm13, %v189_v15, %v203_v23  ;;  %v358_v37 = vsel %vm356_vm1, %v189_v15, %v203_v23 }
  0x72   :  { %v208_v45 = vsel %vm201_vm12, %v204_v24, %v207_v34  ;;  %v362_v47 = vsel %vm355_vm15, %v358_v37, %v361_v26 }
  0x73   :  { %v495_v12 = vadd.f32 0.041655596, %v494_v31  ;;  %v502_v17 = vadd.f32 0.008332121, %v501_v10  ;;  %v209_v4 = vsel %vm198_vm8, nan, %v208_v45  ;;  %v363_v48 = vsel %vm198_vm8, nan, %v362_v47 }
  0x75   :  { %v496_v13 = vmul.f32 %v495_v12, %v493_v7  ;;  %v503_v14 = vmul.f32 %v502_v17, %v493_v7 }
  0x77   :  { %v497_v18 = vadd.f32 -0.4999988, %v496_v13  ;;  %v504_v19 = vadd.f32 -0.16666654, %v503_v14 }
  0x79   :  { %v498_v60 = vmul.f32 %v497_v18, %v493_v7  ;;  %v505_v21 = vmul.f32 %v504_v19, %v493_v7 }
  0x7b   :  { %v499_v25 = vadd.f32 1.0, %v498_v60  ;;  %v506_v27 = vadd.f32 1.0, %v505_v21 }
  0x7d   :  { %v507_v29 = vmul.f32 %v506_v27, %v491_v6  ;;  %v515_v33 = vxor.u32 2147483648, %v499_v25 }
  0x7f   :  { %v512_v32 = vxor.u32 2147483648, %v507_v29  ;;  %v516_v2 = vsel %vm514_vm3, %v515_v33, %v507_v29  ;;  %v671_v38 = vsel %vm669_vm4, %v515_v33, %v507_v29 }
  0x81   :  { %v513_v40 = vsel %vm511_vm5, %v499_v25, %v512_v32  ;;  %v668_v41 = vsel %vm666_vm7, %v499_v25, %v512_v32 }
  0x82   :  { %v517_v49 = vsel %vm510_vm2, %v513_v40, %v516_v2  ;;  %v672_v50 = vsel %vm665_vm6, %v668_v41, %v671_v38 }
  0x83   :  { %v518_v51 = vsel %vm508_vm9, nan, %v517_v49  ;;  %v673_v28 = vsel %vm508_vm9, nan, %v672_v50 }
  0x84   :  { %v675_v52 = vmul.f32 %v674_v42, %v518_v51  ;;  %v680_v55 = vmul.f32 %v679_v43, %v673_v28 }
  0x86   :  { %v677_v56 = vadd.f32 %v676_v22, %v675_v52  ;;  %v682_v57 = vadd.f32 %v681_v54, %v680_v55 }
  0x88   :  { %v678_v30 = vmul.f32 %v677_v56, %v209_v4  ;;  %v683_v39 = vmul.f32 %v682_v57, %v363_v48 }
  0x8a   :  { %v684_v46 = vadd.f32 %v683_v39, %v678_v30 }
  0x8c   :  { %685 = vst [vmem:[#allocation9] sm:$0xff] %v684_v46 }
  0x8d   :  { %696 = dma.vmem_to_hbm [thread:$0]  %s692_s28, 128, %s694_s4, [#allocation6]  }
  0x8e   :  { %820 = dma.done.wait [#allocation6], 128  }
  0x8f   :  { %821 = vsyncadd [#allocation6], 4294967168 }
  0x90   :  { %701 = vsyncpa [#allocation5], 1 }
  0x91   :  { %702 = vsyncpa [#allocation8], 1 }
  0x92   :  { %703 = vsyncpa [#allocation6], 1 }

</bundles_post_ra>
